<compile_context>
chip_gen: v7x
topology: tpu7x:2x2x1
jax: 0.10.0
libtpu: 0.0.40
codegen_flags: <defaults>
</compile_context>

<pallas_src>
import functools

import jax
import jax.numpy as jnp
from jax.experimental import pallas as pl
from jax.experimental.pallas import tpu as pltpu


_LANE = 128
_MIN_PIPELINE_BLOCK_BYTES = 2 * 1024 * 1024   # don't shrink blocks below this
                                              # just to add pipeline depth


def _cdiv(a, b):
    return -(-a // b)


@functools.lru_cache(maxsize=1)
def _vmem_budgets():
    """(scoped vmem limit, per-block budget, min grid steps) per generation."""
    try:
        info = pltpu.get_tpu_info()
        vmem_cap = getattr(info, "vmem_capacity_bytes", 64 * 1024 * 1024)
    except Exception:  # not on TPU / query unavailable -> conservative default
        vmem_cap = 64 * 1024 * 1024
    if vmem_cap >= 128 * 1024 * 1024:        # v5e / v6e: 128 MiB VMEM, 1 core
        scoped = 100 * 1024 * 1024
        block = 22 * 1024 * 1024             # 2 in + 2 out buffers ~= 88 MiB
        min_steps = 4
    else:                                    # v7x: 64 MiB per TC, 2 cores
        scoped = 48 * 1024 * 1024
        block = 11 * 1024 * 1024             # 4 x 11 MiB ~= 44 MiB
        min_steps = 8                        # ~4 steps per TensorCore
    return scoped, block, min_steps


# ---------------------------------------------------------------------------
# Fused single-pass kernel: whole (TN, C, HW) slab resident per grid step.
# ---------------------------------------------------------------------------
def _se_fused_kernel(x_ref, w1t_ref, b1_ref, w2t_ref, b2_ref, o_ref, *, inv_hw):
    # x_ref: (TN, C, HW); w1t: (C, Cr); b1: (1, Cr); w2t: (Cr, C); b2: (1, C)
    x = x_ref[...]                                          # input dtype slab
    # Squeeze: global average pool; accumulate in f32 without materializing an
    # f32 copy of the whole slab.
    m = jnp.sum(x, axis=2, dtype=jnp.float32) * inv_hw       # (TN, C)
    # Excitation: batched, lane-dense matmuls on the MXU; bias folded in.
    h = jnp.dot(m, w1t_ref[...], preferred_element_type=jnp.float32) + b1_ref[...]
    h = jnp.maximum(h, 0.0)                                  # (TN, Cr)
    s = jnp.dot(h, w2t_ref[...], preferred_element_type=jnp.float32) + b2_ref[...]
    s = jax.nn.sigmoid(s)                                    # (TN, C), f32
    # Scale in the input dtype (no full-slab f32 temporary).
    o_ref[...] = (x * s.astype(x.dtype)[:, :, None]).astype(o_ref.dtype)


def _choose_batch_tile(n, slab_bytes, max_block_bytes, min_steps):
    """Batch tile: fill the block budget, but keep >= min_steps grid steps for
    DMA-in / compute / writeback overlap as long as blocks stay >= ~2 MiB."""
    tn_cap = max(1, min(n, max_block_bytes // slab_bytes))
    tn_depth = max(1, n // min_steps)                    # yields >= min_steps steps
    tn_floor = max(1, _cdiv(_MIN_PIPELINE_BLOCK_BYTES, slab_bytes))
    tn = min(tn_cap, max(tn_depth, min(tn_floor, tn_cap)))
    return max(1, tn)


def _se_fused(x2, w1, b1, w2, b2, max_block_bytes, vmem_limit, min_steps):
    n, c, hw = x2.shape
    cr = w1.shape[0]
    slab_bytes = c * hw * jnp.dtype(x2.dtype).itemsize
    tn = _choose_batch_tile(n, slab_bytes, max_block_bytes, min_steps)

    w1t = jnp.transpose(w1)                                 # (C, Cr)
    w2t = jnp.transpose(w2)                                 # (Cr, C)
    b1r = jnp.reshape(b1, (1, cr)).astype(jnp.float32)      # lane-dense rows
    b2r = jnp.reshape(b2, (1, c)).astype(jnp.float32)

    kernel = functools.partial(_se_fused_kernel, inv_hw=1.0 / hw)
    # cdiv grid: a ragged last batch block reads stale rows, but every row is
    # independent and out-of-bounds writes are dropped, so results are exact.
    return pl.pallas_call(
        kernel,
        out_shape=jax.ShapeDtypeStruct((n, c, hw), x2.dtype),
        grid=(_cdiv(n, tn),),
        in_specs=[
            pl.BlockSpec((tn, c, hw), lambda i: (i, 0, 0)),
            pl.BlockSpec((c, cr), lambda i: (0, 0)),
            pl.BlockSpec((1, cr), lambda i: (0, 0)),
            pl.BlockSpec((cr, c), lambda i: (0, 0)),
            pl.BlockSpec((1, c), lambda i: (0, 0)),
        ],
        out_specs=pl.BlockSpec((tn, c, hw), lambda i: (i, 0, 0)),
        compiler_params=pltpu.CompilerParams(
            dimension_semantics=("parallel",),
            vmem_limit_bytes=vmem_limit,
        ),
    )(x2, w1t, b1r, w2t, b2r)


# ---------------------------------------------------------------------------
# Two-pass fallback: pass 1 = tiled channel-sum reduction + gate MLP finalize,
# pass 2 = tiled rescale.  Used only when one (C, HW) slab exceeds the budget.
# ---------------------------------------------------------------------------
def _se_gate_kernel(x_ref, w1_ref, b1_ref, w2_ref, b2_ref, s_ref, acc_ref,
                    *, inv_hw, hw, thw):
    # x_ref: (1, C, THW); w1: (Cr, C); b1: (Cr, 1); w2: (C, Cr); b2: (C, 1)
    # s_ref: (1, C, 1) gate output; acc_ref: (C, 1) f32 channel-sum accumulator.
    t = pl.program_id(1)

    @pl.when(t == 0)
    def _init():
        acc_ref[...] = jnp.zeros_like(acc_ref)

    xt = x_ref[0]                                            # (C, THW)
    if hw % thw != 0:
        # Ragged last tile: out-of-range lanes hold stale VMEM -> zero them
        # before the reduction (cheap VPU select, hidden under the HBM stream).
        lane = jax.lax.broadcasted_iota(jnp.int32, xt.shape, 1) + t * thw
        xt = jnp.where(lane < hw, xt, jnp.zeros_like(xt))
    acc_ref[...] += jnp.sum(xt, axis=1, keepdims=True, dtype=jnp.float32)

    @pl.when(t == pl.num_programs(1) - 1)
    def _finalize():
        # Gate MLP runs once per image; tiny, so the (C,1) GEMV form is fine.
        m = acc_ref[...] * inv_hw                                        # (C, 1)
        h = jnp.dot(w1_ref[...], m, preferred_element_type=jnp.float32) + b1_ref[...]
        h = jnp.maximum(h, 0.0)                                          # (Cr, 1)
        s = jnp.dot(w2_ref[...], h, preferred_element_type=jnp.float32) + b2_ref[...]
        s_ref[0] = jax.nn.sigmoid(s).astype(s_ref.dtype)                 # (C, 1)


def _se_scale_kernel(x_ref, s_ref, o_ref):
    # x_ref: (1, C, THW); s_ref: (1, C, 1) broadcast along the lane axis.
    x = x_ref[...]
    o_ref[...] = (x * s_ref[...].astype(x.dtype)).astype(o_ref.dtype)


def _se_two_pass(x2, w1, b1, w2, b2, max_block_bytes, vmem_limit):
    n, c, hw = x2.shape
    cr = w1.shape[0]
    itemsize = jnp.dtype(x2.dtype).itemsize

    # Spatial tile: as large as the block budget allows (multiple of 128 lanes);
    # only 2+ tiles are needed for double-buffering and the fused/two-pass
    # switch already guarantees hw > thw_budget, so no artificial tile cap.
    thw_budget = max(_LANE, (max_block_bytes // (c * itemsize)) // _LANE * _LANE)
    if hw <= thw_budget:
        thw, n_t = hw, 1                      # degenerate: full-extent block
    else:
        thw, n_t = thw_budget, _cdiv(hw, thw_budget)   # ragged tail masked

    b1c = jnp.reshape(b1, (cr, 1)).astype(jnp.float32)
    b2c = jnp.reshape(b2, (c, 1)).astype(jnp.float32)

    # Pass 1: channel sums over HW tiles; gate computed in the finalize step.
    gate = pl.pallas_call(
        functools.partial(_se_gate_kernel, inv_hw=1.0 / hw, hw=hw, thw=thw),
        out_shape=jax.ShapeDtypeStruct((n, c, 1), jnp.float32),
        grid=(n, n_t),
        in_specs=[
            pl.BlockSpec((1, c, thw), lambda i, t: (i, 0, t)),
            pl.BlockSpec((cr, c), lambda i, t: (0, 0)),
            pl.BlockSpec((cr, 1), lambda i, t: (0, 0)),
            pl.BlockSpec((c, cr), lambda i, t: (0, 0)),
            pl.BlockSpec((c, 1), lambda i, t: (0, 0)),
        ],
        out_specs=pl.BlockSpec((1, c, 1), lambda i, t: (i, 0, 0)),
        scratch_shapes=[pltpu.VMEM((c, 1), jnp.float32)],
        compiler_params=pltpu.CompilerParams(
            dimension_semantics=("parallel", "arbitrary"),
            vmem_limit_bytes=vmem_limit,
        ),
    )(x2, w1, b1c, w2, b2c)

    # Pass 2: rescale x by the gate, tiled over (N, HW), both axes parallel.
    # Out-of-bounds writes in the ragged last tile are dropped automatically.
    out = pl.pallas_call(
        _se_scale_kernel,
        out_shape=jax.ShapeDtypeStruct((n, c, hw), x2.dtype),
        grid=(n, n_t),
        in_specs=[
            pl.BlockSpec((1, c, thw), lambda i, t: (i, 0, t)),
            pl.BlockSpec((1, c, 1), lambda i, t: (i, 0, 0)),
        ],
        out_specs=pl.BlockSpec((1, c, thw), lambda i, t: (i, 0, t)),
        compiler_params=pltpu.CompilerParams(
            dimension_semantics=("parallel", "parallel"),
            vmem_limit_bytes=vmem_limit,
        ),
    )(x2, gate)
    return out


# ---------------------------------------------------------------------------
# Public wrapper
# ---------------------------------------------------------------------------
def se_module(x, w1, b1, w2, b2, *, max_block_bytes=None):
    """SEModule forward.  x: (N, C, H, W); w1: (C//r, C); w2: (C, C//r)."""
    n, c, h, w = x.shape
    hw = h * w
    x2 = x.reshape(n, c, hw)                    # contiguous reshape: no copy

    vmem_limit, block_budget, min_steps = _vmem_budgets()
    if max_block_bytes is None:
        max_block_bytes = block_budget

    slab_bytes = c * hw * jnp.dtype(x.dtype).itemsize
    if slab_bytes <= max_block_bytes:
        out = _se_fused(x2, w1, b1, w2, b2, max_block_bytes, vmem_limit, min_steps)
    else:
        out = _se_two_pass(x2, w1, b1, w2, b2, max_block_bytes, vmem_limit)

    return out.reshape(n, c, h, w)


def se_reference(x, w1, b1, w2, b2):
    """Plain-JAX reference mirroring the PyTorch forward."""
    m = x.mean(axis=(2, 3), keepdims=True)                        # (N,C,1,1)
    h = jnp.einsum("oc,nchw->nohw", w1, m) + b1.reshape(1, -1, 1, 1)
    h = jnp.maximum(h, 0.0)
    s = jnp.einsum("co,nohw->nchw", w2, h) + b2.reshape(1, -1, 1, 1)
    s = jax.nn.sigmoid(s)
    return x * s


if __name__ == "__main__":
    key = jax.random.PRNGKey(0)

    def make_inputs(k, n, c, reduction, h, w):
        cr = c // reduction
        kx, k1, k2, k3, k4 = jax.random.split(k, 5)
        x = jax.random.normal(kx, (n, c, h, w), dtype=jnp.float32)
        w1 = jax.random.normal(k1, (cr, c), dtype=jnp.float32) * 0.5
        b1 = jax.random.normal(k2, (cr,), dtype=jnp.float32) * 0.1
        w2 = jax.random.normal(k3, (c, cr), dtype=jnp.float32) * 0.5
        b2 = jax.random.normal(k4, (c,), dtype=jnp.float32) * 0.1
        return x, w1, b1, w2, b2

    ka, kb, kc, kd = jax.random.split(key, 4)

    # 1) fused single-pass path: SEModule(channels=4, reduction=2), 16x16 input.
    x, w1, b1, w2, b2 = make_inputs(ka, 2, 4, 2, 16, 16)
    out = se_module(x, w1, b1, w2, b2)
    jax.block_until_ready(out)
    ref = se_reference(x, w1, b1, w2, b2)
    assert out.shape == ref.shape
    assert jnp.max(jnp.abs(out - ref)) < 1e-4, "fused path mismatch"

    # 2) two-pass fallback, forced via a tiny block budget (exact HW tiling).
    out2 = se_module(x, w1, b1, w2, b2, max_block_bytes=2048)
    jax.block_until_ready(out2)
    assert jnp.max(jnp.abs(out2 - ref)) < 1e-4, "two-pass path mismatch"

    # 3) fused path with non-128-multiple spatial size (full-extent HW block,
    #    no padding / no slicing).
    xp, w1p, b1p, w2p, b2p = make_inputs(kb, 2, 8, 4, 7, 7)
    outp = se_module(xp, w1p, b1p, w2p, b2p)
    jax.block_until_ready(outp)
    refp = se_reference(xp, w1p, b1p, w2p, b2p)
    assert jnp.max(jnp.abs(outp - refp)) < 1e-4, "padded-free fused path mismatch"

    # 4) two-pass fallback with a ragged last spatial tile (18x18 = 324 lanes,
    #    tile 128 -> tiles of 128/128/68; masked reduction + masked writeback).
    xr, w1r, b1r, w2r, b2r = make_inputs(kc, 2, 4, 2, 18, 18)
    outr = se_module(xr, w1r, b1r, w2r, b2r, max_block_bytes=2048)
    jax.block_until_ready(outr)
    refr = se_reference(xr, w1r, b1r, w2r, b2r)
    assert jnp.max(jnp.abs(outr - refr)) < 1e-4, "ragged two-pass mismatch"

    # 5) fused path with a cdiv batch grid (N=3, TN=2 -> ragged last block).
    xb, w1b, b1b, w2b, b2b = make_inputs(kd, 3, 4, 2, 16, 16)
    outb = se_module(xb, w1b, b1b, w2b, b2b, max_block_bytes=8192)
    jax.block_until_ready(outb)
    refb = se_reference(xb, w1b, b1b, w2b, b2b)
    assert jnp.max(jnp.abs(outb - refb)) < 1e-4, "ragged-batch fused mismatch"

    print("KERNEL_OK")
</pallas_src>

<mosaic_0001>
module attributes {stable_mosaic.version = 11 : i64} {
  func.func @_se_fused_kernel(%arg0: i32, %arg1: memref<2x4x256xf32, #tpu.memory_space<vmem>>, %arg2: memref<4x2xf32, #tpu.memory_space<vmem>>, %arg3: memref<1x2xf32, #tpu.memory_space<vmem>>, %arg4: memref<2x4xf32, #tpu.memory_space<vmem>>, %arg5: memref<1x4xf32, #tpu.memory_space<vmem>>, %arg6: memref<2x4x256xf32, #tpu.memory_space<vmem>>) attributes {dimension_semantics = [#tpu.dimension_semantics<parallel>], iteration_bounds = array<i64: 1>, scalar_prefetch = 0 : i64, scratch_operands = 0 : i64, tpu.core_type = #tpu.core_type<tc>, window_params = [{transform_indices = @transform_0, window_bounds = array<i64: 2, 4, 256>}, {pipeline_mode = #tpu.pipeline_mode<synchronous>, transform_indices = @transform_1, window_bounds = array<i64: 4, 2>}, {pipeline_mode = #tpu.pipeline_mode<synchronous>, transform_indices = @transform_2, window_bounds = array<i64: 1, 2>}, {pipeline_mode = #tpu.pipeline_mode<synchronous>, transform_indices = @transform_3, window_bounds = array<i64: 2, 4>}, {pipeline_mode = #tpu.pipeline_mode<synchronous>, transform_indices = @transform_4, window_bounds = array<i64: 1, 4>}, {transform_indices = @transform_5, window_bounds = array<i64: 2, 4, 256>}]} {
    %c0 = arith.constant 0 : index
    %c0_0 = arith.constant 0 : index
    %c0_1 = arith.constant 0 : index
    %0 = vector.load %arg1[%c0, %c0_0, %c0_1] : memref<2x4x256xf32, #tpu.memory_space<vmem>>, vector<2x4x256xf32>
    %cst = arith.constant dense<0.000000e+00> : vector<2x4xf32>
    %1 = vector.multi_reduction <add>, %0, %cst [2] : vector<2x4x256xf32> to vector<2x4xf32>
    %cst_2 = arith.constant 3.906250e-03 : f32
    %2 = vector.broadcast %cst_2 : f32 to vector<2x4xf32>
    %3 = arith.mulf %1, %2 : vector<2x4xf32>
    %c0_3 = arith.constant 0 : index
    %c0_4 = arith.constant 0 : index
    %4 = vector.load %arg2[%c0_3, %c0_4] : memref<4x2xf32, #tpu.memory_space<vmem>>, vector<4x2xf32>
    %cst_5 = arith.constant dense<0.000000e+00> : vector<2x2xf32>
    %5 = tpu.matmul %3, %4, %cst_5 {dimension_numbers = #tpu.dot_dimension_numbers<[1], [0], [0], [1], [0, 0, 1, 1], [], []>} : vector<2x4xf32>, vector<4x2xf32>, vector<2x2xf32> -> vector<2x2xf32>
    %c0_6 = arith.constant 0 : index
    %c0_7 = arith.constant 0 : index
    %6 = vector.load %arg3[%c0_6, %c0_7] : memref<1x2xf32, #tpu.memory_space<vmem>>, vector<1x2xf32>
    %7 = vector.broadcast %6 : vector<1x2xf32> to vector<2x2xf32>
    %8 = arith.addf %5, %7 : vector<2x2xf32>
    %cst_8 = arith.constant 0.000000e+00 : f32
    %9 = vector.broadcast %cst_8 : f32 to vector<2x2xf32>
    %10 = arith.maximumf %8, %9 : vector<2x2xf32>
    %c0_9 = arith.constant 0 : index
    %c0_10 = arith.constant 0 : index
    %11 = vector.load %arg4[%c0_9, %c0_10] : memref<2x4xf32, #tpu.memory_space<vmem>>, vector<2x4xf32>
    %cst_11 = arith.constant dense<0.000000e+00> : vector<2x4xf32>
    %12 = tpu.matmul %10, %11, %cst_11 {dimension_numbers = #tpu.dot_dimension_numbers<[1], [0], [0], [1], [0, 0, 1, 1], [], []>} : vector<2x2xf32>, vector<2x4xf32>, vector<2x4xf32> -> vector<2x4xf32>
    %c0_12 = arith.constant 0 : index
    %c0_13 = arith.constant 0 : index
    %13 = vector.load %arg5[%c0_12, %c0_13] : memref<1x4xf32, #tpu.memory_space<vmem>>, vector<1x4xf32>
    %14 = vector.broadcast %13 : vector<1x4xf32> to vector<2x4xf32>
    %15 = arith.addf %12, %14 : vector<2x4xf32>
    %16 = arith.negf %15 : vector<2x4xf32>
    %17 = math.exp %16 : vector<2x4xf32>
    %cst_14 = arith.constant 1.000000e+00 : f32
    %18 = vector.broadcast %cst_14 : f32 to vector<2x4xf32>
    %19 = arith.addf %18, %17 : vector<2x4xf32>
    %20 = arith.divf %18, %19 : vector<2x4xf32>
    %21 = vector.shape_cast %20 : vector<2x4xf32> to vector<2x4x1xf32>
    %22 = vector.broadcast %21 : vector<2x4x1xf32> to vector<2x4x256xf32>
    %23 = arith.mulf %0, %22 : vector<2x4x256xf32>
    %c0_15 = arith.constant 0 : index
    %c0_16 = arith.constant 0 : index
    %c0_17 = arith.constant 0 : index
    %24 = vector.load %arg6[%c0_15, %c0_16, %c0_17] : memref<2x4x256xf32, #tpu.memory_space<vmem>>, vector<2x4x256xf32>
    tpu.vector_store %arg6[%c0_15, %c0_16, %c0_17], %23 {strides = array<i32>} : memref<2x4x256xf32, #tpu.memory_space<vmem>>, vector<2x4x256xf32>,
    return
  }
  func.func @transform_0(%arg0: i32) -> (i32, i32, i32) {
    %c0_i32 = arith.constant 0 : i32
    %c0_i32_0 = arith.constant 0 : i32
    %c0_i32_1 = arith.constant 0 : i32
    return %arg0, %c0_i32, %c0_i32_0 : i32, i32, i32
  }
  func.func @transform_1(%arg0: i32) -> (i32, i32) {
    %c0_i32 = arith.constant 0 : i32
    %c0_i32_0 = arith.constant 0 : i32
    %c0_i32_1 = arith.constant 0 : i32
    return %c0_i32, %c0_i32_0 : i32, i32
  }
  func.func @transform_2(%arg0: i32) -> (i32, i32) {
    %c0_i32 = arith.constant 0 : i32
    %c0_i32_0 = arith.constant 0 : i32
    %c0_i32_1 = arith.constant 0 : i32
    return %c0_i32, %c0_i32_0 : i32, i32
  }
  func.func @transform_3(%arg0: i32) -> (i32, i32) {
    %c0_i32 = arith.constant 0 : i32
    %c0_i32_0 = arith.constant 0 : i32
    %c0_i32_1 = arith.constant 0 : i32
    return %c0_i32, %c0_i32_0 : i32, i32
  }
  func.func @transform_4(%arg0: i32) -> (i32, i32) {
    %c0_i32 = arith.constant 0 : i32
    %c0_i32_0 = arith.constant 0 : i32
    %c0_i32_1 = arith.constant 0 : i32
    return %c0_i32, %c0_i32_0 : i32, i32
  }
  func.func @transform_5(%arg0: i32) -> (i32, i32, i32) {
    %c0_i32 = arith.constant 0 : i32
    %c0_i32_0 = arith.constant 0 : i32
    %c0_i32_1 = arith.constant 0 : i32
    return %arg0, %c0_i32, %c0_i32_0 : i32, i32, i32
  }
}

</mosaic_0001>

<bundles_post_ra>
// kernel: tpu_custom_call.1
= control target key start
LH: loop header
LB: loop body
LE: loop exit
PB: predicated region body
PF: predicated region fallthrough
CT: control target
= control target key end

     0   :  { %10 = vsyncpa [#allocation3], 0  ;;  %s478_s0 = inlined_call_operand.hbm [shape: f32[2,4,256], index: 0, kind: input, shape index: {}]   ;;  %s479_s1 = inlined_call_operand.vmem [shape: f32[4,2], index: 1, kind: input, shape index: {}]   ;;  %s480_s2 = inlined_call_operand.vmem [shape: f32[1,2], index: 2, kind: input, shape index: {}]   ;;  %s481_s3 = inlined_call_operand.vmem [shape: f32[2,4], index: 3, kind: input, shape index: {}]   ;;  %s482_s4 = inlined_call_operand.vmem [shape: f32[1,4], index: 4, kind: input, shape index: {}]   ;;  %s483_s5 = inlined_call_operand.hbm [shape: f32[2,4,256], index: 5, kind: output, shape index: {}]  }
   0x1   :  { %11 = vsyncpa [#allocation4], 0  ;;  %s382_s18 = smov [#allocation2]   ;;  %s334_s22 = scalar_lea.hbm %s478_s0, 256 }
   0x2   :  { %s17_s19 = sshll.u32 %s382_s18, 4  ;;  %p335_p0 = scmp.ne.s32.totalorder %s478_s0, %s334_s22  ;;  %s18_s19 = int_to_ptr.vmem [resolvable:$true] %s17_s19 }
   0x3   :  { %p338_p1 = scmp.lt.u32.totalorder %s334_s22, %s478_s0 }
   0x5   :  { %p340_p2 = pnand %p338_p1, %p335_p0 }
   0x7   :  { %343 = shalt.err (!%p340_p2)
}
   0x8   :  { %s344_s27 = scalar_lea.vmem %s18_s19, 256  ;;  %p349_p4 = scmp.lt.s32.totalorder %s18_s19, %s18_s19 }
   0x9   :  { %p345_p3 = scmp.ne.s32.totalorder %s18_s19, %s344_s27  ;;  %p350_p5 = scmp.lt.s32.totalorder %s344_s27, %s344_s27 }
   0xb   :  { %p351_p6 = por %p350_p5, %p349_p4 }
   0xd   :  { %p352_p7 = pnand %p351_p6, %p345_p3 }
   0xf   :  { %355 = shalt.err (!%p352_p7)
}
  0x10   :  { %s383_s28 = smov 128   ;;  %s384_s29 = smov 8  }
  0x11   :  { %23 = dma.hbm_to_vmem [thread:$0]  %s478_s0, 256, %s18_s19, [#allocation3], %s383_s28, %s383_s28, %s384_s29  }
  0x12   :  { %378 = dma.done.wait [#allocation3], 256  }
  0x13   :  { %379 = vsyncadd [#allocation3], 4294967040  ;;  %vm43_vm0 = vcmask 1043456   ;;  %v434_v0 = vld [vmem:[#allocation2] sm:$0xff]  ;;  %v436_v1 = vld [vmem:[#allocation2 + $0x8] sm:$0xff]  ;;  %v385_v11 = vmov 0.0   ;;  %v66_v12 = vlaneseq }
  0x14   :  { %v39_v2 = vcombine.high %v434_v0, %v434_v0  ;;  %v44_v3 = vsel %vm43_vm0, %v434_v0, 0.0  ;;  %v40_v4 = vcombine.high %v436_v1, %v436_v1  ;;  %v49_v6 = vsel %vm43_vm0, %v436_v1, 0.0  ;;  %v56_v10 = vld [vmem:[%s479_s1] sm:$0xf]  ;;  %311 = vmatprep.subr.mxu0 %v385_v11  ;;  %316 = vmatprep.subr.mxu1 %v385_v11 }
  0x15   :  { %vm386_vm1 = vmmov 0   ;;  %312 = vmatpush3.msk.msra.mxu0 %vm43_vm0, %v56_v10  ;;  %v67_v13 = vand.u32 127, %v66_v12  ;;  %v69_v14 = vshrl.u32 %v66_v12, 7  ;;  %vm76_vm2 = vcmask 1041409   ;;  %v155_v23 = vld [vmem:[%s481_s3] sm:$0x3] }
  0x16   :  { %v45_v5 = vsel %vm43_vm0, %v39_v2, 0.0  ;;  %v50_v7 = vsel %vm43_vm0, %v40_v4, 0.0  ;;  %313 = vmatprep.mubr.msk.f32.mxu0 %vm386_vm1, %v385_v11  ;;  %318 = vmatprep.mubr.msk.f32.mxu1 %vm386_vm1, %v385_v11  ;;  %vm78_vm3 = vcmask 31744   ;;  %vm167_vm4 = vcmask 1041408   ;;  %v300_v24 = vld [vmem:[%s480_s2] ss:$0 sm:$0xff] }
  0x17   :  { %v46_v8 = vadd.f32 %v45_v5, %v44_v3  ;;  %v51_v9 = vadd.f32 %v50_v7, %v49_v6  ;;  %v70_v16 = vsub.s32 %v67_v13, %v69_v14  ;;  %317 = vmatpush3.msk.msra.mxu1 %vm167_vm4, %v155_v23  ;;  %vm163_vm5 = vcmask 15360   ;;  %v303_v29 = vld [vmem:[%s482_s4] ss:$0 sm:$0xff]  ;;  %s388_s2 = smov [#allocation5]  }
  0x18   :  { %v249_v36 = vsub.s32 0, %v69_v14  ;;  %v256_v39 = vsub.s32 1, %v69_v14  ;;  %v387_v41 = vmov 839922192   ;;  %s288_s3 = sshll.u32 %s388_s2, 4  ;;  %s289_s3 = int_to_ptr.vmem [resolvable:$true] %s288_s3 }
  0x19   :  { %47 = vadd.xlane.f32.xlu0 %v46_v8  ;;  %v264_v42 = vunpack.c.l.s4 %v387_v41  ;;  %s356_s4 = scalar_lea.vmem %s289_s3, 256  ;;  %p361_p9 = scmp.lt.s32.totalorder %s289_s3, %s289_s3 }
  0x1a   :  { %p357_p8 = scmp.ne.s32.totalorder %s289_s3, %s356_s4  ;;  %p362_p10 = scmp.lt.s32.totalorder %s356_s4, %s356_s4 }
  0x1b   :  { %v265_v43 = vunpack.c.0.s8 %v264_v42 }
  0x1c   :  { %p363_p11 = por %p362_p10, %p361_p9 }
  0x1d   :  { %52 = vadd.xlane.f32.xlu0 %v51_v9  ;;  %v268_v44 = vsub.s32 %v265_v43, %v69_v14 }
  0x1e   :  { %p364_p12 = pnand %p363_p11, %p357_p8 }
  0xa6   :  { %v48_v15 = vpop.xlane.xlu0 %47 }
  0xa7   :  { %v54_v17 = vmul.f32 0.00390625, %v48_v15 }
  0xa9   :  { %v71_v20 = vrot.slane %v54_v17, %v70_v16 }
  0xaa   :  { %v53_v18 = vpop.xlane.xlu0 %52 }
  0xab   :  { %v55_v19 = vmul.f32 0.00390625, %v53_v18 }
  0xad   :  { %v75_v21 = vrot.slane %v55_v19, %v70_v16 }
  0xaf   :  { %v77_v22 = vsel %vm76_vm2, %v75_v21, %v71_v20 }
  0xb0   :  { %314 = vmatmul.mubr.msk.f32.vlgmr.msra.gmra.mrb[0].mxu0 %vm78_vm3, %v77_v22 }
 0x183   :  { %v150_v25 = vpop.f32.mrb[0].mxu0 }
 0x184   :  { %v151_v26 = vadd.f32 %v300_v24, %v150_v25  ;;  %v315_v27 = vpop.f32.mrb[1].mxu0 }
 0x186   :  { %v154_v28 = vmax.f32 %v151_v26, 0.0 }
 0x188   :  { %319 = vmatmul.mubr.msk.f32.vlgmr.msra.gmra.mrb[0].mxu1 %vm163_vm5, %v154_v28 }
 0x25b   :  { %v237_v30 = vpop.f32.mrb[0].mxu1 }
 0x25c   :  { %v238_v31 = vadd.f32 %v303_v29, %v237_v30  ;;  %v320_v32 = vpop.f32.mrb[1].mxu1 }
 0x25e   :  { %v306_v33 = vmul.f32 -1.442695, %v238_v31 }
 0x260   :  { %330 = vpow2.f32 %v306_v33 }
 0x26a   :  { %v331_v34 = vpop.eup %330 }
 0x26b   :  { %v244_v35 = vadd.f32 1.0, %v331_v34 }
 0x26d   :  { %332 = vrcp.f32 %v244_v35 }
 0x277   :  { %v333_v37 = vpop.eup %332 }
 0x278   :  { %v250_v38 = vrot.slane %v333_v37, %v249_v36  ;;  %v257_v40 = vrot.slane %v333_v37, %v256_v39 }
 0x27a   :  { %252 = vbcast.lane.b32.xlu1 %v250_v38, 256 }
 0x27e   :  { %259 = vbcast.lane.b32.xlu1 %v257_v40, 256 }
 0x2ec   :  { %v253_v45 = vpop.permute.xlu1 %252 }
 0x2ed   :  { %v269_v46 = vrot.slane %v253_v45, %v268_v44 }
 0x2ef   :  { %v279_v47 = vmul.f32 %v269_v46, %v434_v0 }
 0x2f0   :  { %v260_v48 = vpop.permute.xlu1 %259 }
 0x2f1   :  { %281 = vst [vmem:[#allocation5] sm:$0xff] %v279_v47  ;;  %v276_v49 = vrot.slane %v260_v48, %v268_v44 }
 0x2f3   :  { %v280_v50 = vmul.f32 %v276_v49, %v436_v1 }
 0x2f5   :  { %282 = vst [vmem:[#allocation5 + $0x8] sm:$0xff] %v280_v50 }
 0x2f6   :  { %367 = shalt.err (!%p364_p12)
}
 0x2f7   :  { %s368_s15 = scalar_lea.hbm %s483_s5, 256 }
 0x2f8   :  { %p369_p13 = scmp.ne.s32.totalorder %s483_s5, %s368_s15  ;;  %p372_p0 = scmp.lt.u32.totalorder %s368_s15, %s483_s5 }
 0x2fa   :  { %p374_p1 = pnand %p372_p0, %p369_p13 }
 0x2fc   :  { %377 = shalt.err (!%p374_p1)
}
 0x2fd   :  { %294 = dma.vmem_to_hbm [thread:$0]  %s289_s3, 256, %s483_s5, [#allocation4], %s383_s28, %s383_s28, %s384_s29  }
 0x2fe   :  { %380 = dma.done.wait [#allocation4], 256  }
 0x2ff   :  { %381 = vsyncadd [#allocation4], 4294967040 }
 0x300   :  { %298 = vsyncpa [#allocation3], 1 }
 0x301   :  { %299 = vsyncpa [#allocation4], 1 }

</bundles_post_ra>
